<compile_context>
chip_gen: v7x
topology: tpu7x:2x2x1
jax: 0.10.0
libtpu: 0.0.40
codegen_flags: <defaults>
</compile_context>

<pallas_src>
import math
import functools

import jax
import jax.numpy as jnp
from jax.experimental import pallas as pl
from jax.experimental.pallas import tpu as pltpu


def _mha_kernel(q_ref, kh_ref, vh_ref, msk_ref,
                wq_ref, bq_ref, wo_ref, bo_ref,
                out_ref, ctx_sc,
                *, h: int, dk: int, compute_dtype):
    """Grid = (batch, q_tile).  Ref shapes inside the kernel:

      q:    (1, tq, D)    f32  (cast to bf16 in-kernel)
      kh:   (1, h, dk, S) bf16 (K projected, per-head, pre-transposed)
      vh:   (1, h, S, dk) bf16 (V projected, per-head)
      mask: (1, 1, tq, S) int8 (1 = masked out)
      wq/wo: (D, D) bf16  (pre-transposed: kernel computes x @ W^T)
      bq/bo: (1, D) f32
      out:  (1, tq, D) f32
      ctx_sc scratch: (tq, D) f32 (lane-packed per-head context)
    """
    f32 = jnp.float32

    # ---- fused Q projection: one full-width (tq, D) x (D, D) MXU matmul ----
    x_q = q_ref[0].astype(compute_dtype)                                  # (tq, D)
    q_all = (jnp.dot(x_q, wq_ref[...], preferred_element_type=f32)
             + bq_ref[...]).astype(compute_dtype)                         # (tq, D)

    # mask compare hoisted out of the head loop
    is_masked = msk_ref[0, 0] != 0                                        # (tq, S)
    neg_inf = f32(-1e9)
    inv_sqrt_dk = f32(1.0 / math.sqrt(dk))

    # ---- per-head attention; context written lane-packed into ctx_sc ----
    for head in range(h):                                                 # static loop
        qh = q_all[:, head * dk:(head + 1) * dk]                          # (tq, dk)
        s = jnp.dot(qh, kh_ref[0, head],
                    preferred_element_type=f32) * inv_sqrt_dk             # (tq, S)
        s = jnp.where(is_masked, neg_inf, s)

        # numerically-stable softmax in f32
        m = jnp.max(s, axis=-1, keepdims=True)
        e = jnp.exp(s - m)
        attn = e * pl.reciprocal(jnp.sum(e, axis=-1, keepdims=True), approx=True)

        ctx_sc[:, head * dk:(head + 1) * dk] = jnp.dot(
            attn.astype(compute_dtype), vh_ref[0, head],
            preferred_element_type=f32)                                   # (tq, dk)

    # ---- fused output projection: one full-width (tq, D) x (D, D) matmul ----
    out = jnp.dot(ctx_sc[...].astype(compute_dtype), wo_ref[...],
                  preferred_element_type=f32) + bo_ref[...]
    out_ref[0] = out.astype(out_ref.dtype)


def _select_tiling(S, D):
    """Pick (tq, vmem_limit_bytes) from an explicit VMEM working-set model."""
    phys = 64 << 20                       # conservative default: v7x per-core VMEM
    try:
        cap = getattr(pltpu.get_tpu_info(), "vmem_capacity_bytes", None)
        if cap:
            phys = int(cap)
    except Exception:
        pass
    # ~100 MiB on 128 MiB parts (v5e/v6e), ~51 MiB on 64 MiB parts (v7x)
    vmem_limit = max(32 << 20, min(int(phys * 0.80), 100 << 20))
    budget = int(vmem_limit * 0.85)

    # per-grid-step bytes, assuming default double-buffered inputs/outputs
    fixed = (2 * 2 * (S * D * 2)          # K-heads + V-heads inputs (bf16)
             + 2 * 2 * (D * D * 2)        # wq^T + wo^T (bf16)
             + 4 * 2 * (D * 4))           # biases (f32, negligible)

    def need(tq):
        return fixed + (2 * tq * D * 4    # q tile (f32)
                        + 2 * tq * S      # int8 mask tile
                        + 2 * tq * D * 4  # out tile (f32)
                        + tq * D * 4      # ctx scratch (f32)
                        + tq * D * 2      # projected q (bf16)
                        + 3 * tq * S * 4) # scores / exp / attn live intermediates

    if S <= 512 and need(S) <= budget:
        return S, vmem_limit
    for tq in (512, 256, 128, 64, 32, 16, 8):
        if tq < S and S % tq == 0 and need(tq) <= budget:
            return tq, vmem_limit
    for tq in (8, 16, 32, 64, 128, 256, 512):   # smallest divisor fallback
        if tq < S and S % tq == 0:
            return tq, vmem_limit
    return S, vmem_limit


def multi_head_attention(k, q, v, mask, params, *, h: int,
                         compute_dtype=jnp.bfloat16):
    """k, q, v: (B, S, D); mask: broadcastable to (B, 1, S, S); params: torch layout."""
    B, S, D = q.shape
    assert D % h == 0, "d_model_size is not divisible by h"
    dk = D // h
    f32 = jnp.float32
    cd = compute_dtype

    tq, vmem_limit = _select_tiling(S, D)
    nq = S // tq

    # ---- weights: pre-transpose once (torch Linear computes x @ W.T + b) ----
    wq_t = jnp.asarray(params["wq"], f32).T.astype(cd)       # (D, D)
    wk_t = jnp.asarray(params["wk"], f32).T.astype(cd)
    wv_t = jnp.asarray(params["wv"], f32).T.astype(cd)
    wo_t = jnp.asarray(params["wo"], f32).T.astype(cd)
    bq = jnp.asarray(params["bq"], f32).reshape(1, D)
    bk = jnp.asarray(params["bk"], f32).reshape(1, D)
    bv = jnp.asarray(params["bv"], f32).reshape(1, D)
    bo = jnp.asarray(params["bo"], f32).reshape(1, D)

    # ---- K/V projections hoisted out of the kernel: one full-width matmul each,
    #      once per call, laid out per head. K is stored transposed (B, h, dk, S)
    #      so the in-kernel QK^T is a plain NN matmul with a lane-dense output. ----
    def project(x, w_t, b):
        y = jax.lax.dot_general(x.astype(cd), w_t, (((2,), (0,)), ((), ())),
                                preferred_element_type=f32) + b
        return y.reshape(B, S, h, dk)

    k_h = project(k, wk_t, bk).transpose(0, 2, 3, 1).astype(cd)    # (B, h, dk, S)
    v_h = project(v, wv_t, bv).transpose(0, 2, 1, 3).astype(cd)    # (B, h, S, dk)

    # int8 "is masked out" indicator (minimizes mask HBM traffic)
    masked = jnp.broadcast_to(mask == 0, (B, 1, S, S)).astype(jnp.int8)

    q_spec   = pl.BlockSpec((1, tq, D), lambda b, i: (b, i, 0))
    kh_spec  = pl.BlockSpec((1, h, dk, S), lambda b, i: (b, 0, 0, 0))  # constant over i
    vh_spec  = pl.BlockSpec((1, h, S, dk), lambda b, i: (b, 0, 0, 0))  # constant over i
    m_spec   = pl.BlockSpec((1, 1, tq, S), lambda b, i: (b, 0, i, 0))
    w_spec   = pl.BlockSpec((D, D), lambda b, i: (0, 0))
    b_spec   = pl.BlockSpec((1, D), lambda b, i: (0, 0))
    out_spec = pl.BlockSpec((1, tq, D), lambda b, i: (b, i, 0))

    kernel = functools.partial(_mha_kernel, h=h, dk=dk, compute_dtype=cd)

    return pl.pallas_call(
        kernel,
        out_shape=jax.ShapeDtypeStruct((B, S, D), f32),
        grid_spec=pltpu.PrefetchScalarGridSpec(
            num_scalar_prefetch=0,
            grid=(B, nq),
            in_specs=[q_spec, kh_spec, vh_spec, m_spec,
                      w_spec, b_spec, w_spec, b_spec],
            out_specs=out_spec,
            scratch_shapes=[pltpu.VMEM((tq, D), f32)]),
        compiler_params=pltpu.CompilerParams(
            dimension_semantics=("parallel", "parallel"),
            vmem_limit_bytes=vmem_limit),
    )(q, k_h, v_h, masked, wq_t, bq, wo_t, bo)


def _reference(k, q, v, mask, params, h):
    """Pure-JAX f32 reference matching the PyTorch forward exactly."""
    B, S, D = q.shape
    dk = D // h
    lin = lambda x, w, b: x @ w.T + b[0]
    query = lin(q, params["wq"], params["bq"]).reshape(B, S, h, dk).transpose(0, 2, 1, 3)
    key   = lin(k, params["wk"], params["bk"]).reshape(B, S, h, dk).transpose(0, 2, 1, 3)
    value = lin(v, params["wv"], params["bv"]).reshape(B, S, h, dk).transpose(0, 2, 1, 3)
    scores = jnp.einsum("bhqd,bhkd->bhqk", query, key) / math.sqrt(dk)
    scores = jnp.where(mask == 0, -1e9, scores)
    attn = jax.nn.softmax(scores, axis=-1)
    ctx = jnp.einsum("bhqk,bhkd->bhqd", attn, value)
    x = ctx.transpose(0, 2, 1, 3).reshape(B, S, D)
    return lin(x, params["wo"], params["bo"])


if __name__ == "__main__":
    B, S, D, H = 2, 8, 32, 4   # batch, seq, d_model, heads (d_model % h == 0)

    key0 = jax.random.PRNGKey(0)
    keys = jax.random.split(key0, 12)

    bound = 1.0 / math.sqrt(D)  # PyTorch nn.Linear default init range
    def u(kk, shape):
        return jax.random.uniform(kk, shape, jnp.float32, -bound, bound)

    params = {
        "wq": u(keys[0], (D, D)), "bq": u(keys[1], (1, D)),
        "wk": u(keys[2], (D, D)), "bk": u(keys[3], (1, D)),
        "wv": u(keys[4], (D, D)), "bv": u(keys[5], (1, D)),
        "wo": u(keys[6], (D, D)), "bo": u(keys[7], (1, D)),
    }

    q = jax.random.normal(keys[8], (B, S, D), jnp.float32)
    k = jax.random.normal(keys[9], (B, S, D), jnp.float32)
    v = jax.random.normal(keys[10], (B, S, D), jnp.float32)
    # lower-triangular (causal) mask, shape (B, 1, S, S); zeros are masked out
    mask = jnp.tril(jnp.ones((S, S), jnp.float32))[None, None].repeat(B, axis=0)

    out = multi_head_attention(k, q, v, mask, params, h=H)
    out = jax.block_until_ready(out)

    ref = _reference(k, q, v, mask, params, H)
    assert out.shape == (B, S, D)
    err = float(jnp.max(jnp.abs(out - ref)))
    # bf16 matmul operands (f32 accumulation) -> looser tolerance than pure f32
    assert jnp.allclose(out, ref, atol=3e-2, rtol=3e-2), f"mismatch vs reference, max|err|={err}"

    print("KERNEL_OK")
</pallas_src>

<mosaic_0001>
module attributes {stable_mosaic.version = 11 : i64} {
  func.func @_mha_kernel(%arg0: i32, %arg1: i32, %arg2: memref<1x8x32xf32, #tpu.memory_space<vmem>>, %arg3: memref<1x4x8x8xbf16, #tpu.memory_space<vmem>>, %arg4: memref<1x4x8x8xbf16, #tpu.memory_space<vmem>>, %arg5: memref<1x1x8x8xi8, #tpu.memory_space<vmem>>, %arg6: memref<32x32xbf16, #tpu.memory_space<vmem>>, %arg7: memref<1x32xf32, #tpu.memory_space<vmem>>, %arg8: memref<32x32xbf16, #tpu.memory_space<vmem>>, %arg9: memref<1x32xf32, #tpu.memory_space<vmem>>, %arg10: memref<1x8x32xf32, #tpu.memory_space<vmem>>, %arg11: memref<8x32xf32, #tpu.memory_space<vmem>>) attributes {dimension_semantics = [#tpu.dimension_semantics<parallel>, #tpu.dimension_semantics<parallel>], iteration_bounds = array<i64: 2, 1>, scalar_prefetch = 0 : i64, scratch_operands = 1 : i64, tpu.core_type = #tpu.core_type<tc>, window_params = [{transform_indices = @transform_0, window_bounds = array<i64: 1, 8, 32>}, {transform_indices = @transform_1, window_bounds = array<i64: 1, 4, 8, 8>}, {transform_indices = @transform_2, window_bounds = array<i64: 1, 4, 8, 8>}, {transform_indices = @transform_3, window_bounds = array<i64: 1, 1, 8, 8>}, {pipeline_mode = #tpu.pipeline_mode<synchronous>, transform_indices = @transform_4, window_bounds = array<i64: 32, 32>}, {pipeline_mode = #tpu.pipeline_mode<synchronous>, transform_indices = @transform_5, window_bounds = array<i64: 1, 32>}, {pipeline_mode = #tpu.pipeline_mode<synchronous>, transform_indices = @transform_6, window_bounds = array<i64: 32, 32>}, {pipeline_mode = #tpu.pipeline_mode<synchronous>, transform_indices = @transform_7, window_bounds = array<i64: 1, 32>}, {transform_indices = @transform_8, window_bounds = array<i64: 1, 8, 32>}]} {
    %c0 = arith.constant 0 : index
    %c0_0 = arith.constant 0 : index
    %c0_1 = arith.constant 0 : index
    %0 = vector.load %arg2[%c0, %c0_0, %c0_1] : memref<1x8x32xf32, #tpu.memory_space<vmem>>, vector<1x8x32xf32>
    %1 = vector.shape_cast %0 : vector<1x8x32xf32> to vector<8x32xf32>
    %2 = arith.truncf %1 : vector<8x32xf32> to vector<8x32xbf16>
    %c0_2 = arith.constant 0 : index
    %c0_3 = arith.constant 0 : index
    %3 = vector.load %arg6[%c0_2, %c0_3] : memref<32x32xbf16, #tpu.memory_space<vmem>>, vector<32x32xbf16>
    %cst = arith.constant dense<0.000000e+00> : vector<8x32xf32>
    %4 = tpu.matmul %2, %3, %cst {dimension_numbers = #tpu.dot_dimension_numbers<[1], [0], [0], [1], [0, 0, 1, 1], [], []>} : vector<8x32xbf16>, vector<32x32xbf16>, vector<8x32xf32> -> vector<8x32xf32>
    %c0_4 = arith.constant 0 : index
    %c0_5 = arith.constant 0 : index
    %5 = vector.load %arg7[%c0_4, %c0_5] : memref<1x32xf32, #tpu.memory_space<vmem>>, vector<1x32xf32>
    %6 = vector.broadcast %5 : vector<1x32xf32> to vector<8x32xf32>
    %7 = arith.addf %4, %6 : vector<8x32xf32>
    %8 = arith.truncf %7 : vector<8x32xf32> to vector<8x32xbf16>
    %c0_6 = arith.constant 0 : index
    %c0_7 = arith.constant 0 : index
    %c0_8 = arith.constant 0 : index
    %c0_9 = arith.constant 0 : index
    %9 = vector.load %arg5[%c0_6, %c0_7, %c0_8, %c0_9] : memref<1x1x8x8xi8, #tpu.memory_space<vmem>>, vector<1x1x8x8xi8>
    %10 = vector.shape_cast %9 : vector<1x1x8x8xi8> to vector<8x8xi8>
    %c0_i8 = arith.constant 0 : i8
    %11 = vector.broadcast %c0_i8 : i8 to vector<8x8xi8>
    %12 = arith.cmpi ne, %10, %11 : vector<8x8xi8>
    %13 = vector.extract_strided_slice %8 {offsets = [0, 0], sizes = [8, 8], strides = [1, 1]} : vector<8x32xbf16> to vector<8x8xbf16>
    %c0_10 = arith.constant 0 : index
    %c0_11 = arith.constant 0 : index
    %c0_12 = arith.constant 0 : index
    %c0_13 = arith.constant 0 : index
    %14 = vector.load %arg3[%c0_10, %c0_11, %c0_12, %c0_13] : memref<1x4x8x8xbf16, #tpu.memory_space<vmem>>, vector<1x1x8x8xbf16>
    %15 = vector.shape_cast %14 : vector<1x1x8x8xbf16> to vector<8x8xbf16>
    %cst_14 = arith.constant dense<0.000000e+00> : vector<8x8xf32>
    %16 = tpu.matmul %13, %15, %cst_14 {dimension_numbers = #tpu.dot_dimension_numbers<[1], [0], [0], [1], [0, 0, 1, 1], [], []>} : vector<8x8xbf16>, vector<8x8xbf16>, vector<8x8xf32> -> vector<8x8xf32>
    %cst_15 = arith.constant 0.353553385 : f32
    %17 = vector.broadcast %cst_15 : f32 to vector<8x8xf32>
    %18 = arith.mulf %16, %17 : vector<8x8xf32>
    %cst_16 = arith.constant -1.000000e+09 : f32
    %19 = vector.broadcast %cst_16 : f32 to vector<8x8xf32>
    %20 = arith.select %12, %19, %18 : vector<8x8xi1>, vector<8x8xf32>
    %cst_17 = arith.constant dense<0xFF800000> : vector<8xf32>
    %21 = vector.multi_reduction <maximumf>, %20, %cst_17 [1] : vector<8x8xf32> to vector<8xf32>
    %22 = vector.shape_cast %21 : vector<8xf32> to vector<8x1xf32>
    %23 = vector.broadcast %22 : vector<8x1xf32> to vector<8x8xf32>
    %24 = arith.subf %20, %23 : vector<8x8xf32>
    %25 = math.exp %24 : vector<8x8xf32>
    %cst_18 = arith.constant dense<0.000000e+00> : vector<8xf32>
    %26 = vector.multi_reduction <add>, %25, %cst_18 [1] : vector<8x8xf32> to vector<8xf32>
    %27 = vector.shape_cast %26 : vector<8xf32> to vector<8x1xf32>
    %28 = tpu.reciprocal %27 {approx = true} : vector<8x1xf32> -> vector<8x1xf32>
    %29 = vector.broadcast %28 : vector<8x1xf32> to vector<8x8xf32>
    %30 = arith.mulf %25, %29 : vector<8x8xf32>
    %31 = arith.truncf %30 : vector<8x8xf32> to vector<8x8xbf16>
    %c0_19 = arith.constant 0 : index
    %c0_20 = arith.constant 0 : index
    %c0_21 = arith.constant 0 : index
    %c0_22 = arith.constant 0 : index
    %32 = vector.load %arg4[%c0_19, %c0_20, %c0_21, %c0_22] : memref<1x4x8x8xbf16, #tpu.memory_space<vmem>>, vector<1x1x8x8xbf16>
    %33 = vector.shape_cast %32 : vector<1x1x8x8xbf16> to vector<8x8xbf16>
    %cst_23 = arith.constant dense<0.000000e+00> : vector<8x8xf32>
    %34 = tpu.matmul %31, %33, %cst_23 {dimension_numbers = #tpu.dot_dimension_numbers<[1], [0], [0], [1], [0, 0, 1, 1], [], []>} : vector<8x8xbf16>, vector<8x8xbf16>, vector<8x8xf32> -> vector<8x8xf32>
    %c0_24 = arith.constant 0 : index
    %c0_25 = arith.constant 0 : index
    %35 = vector.load %arg11[%c0_24, %c0_25] : memref<8x32xf32, #tpu.memory_space<vmem>>, vector<8x8xf32>
    tpu.vector_store %arg11[%c0_24, %c0_25], %34 {strides = array<i32>} : memref<8x32xf32, #tpu.memory_space<vmem>>, vector<8x8xf32>,
    %36 = vector.extract_strided_slice %8 {offsets = [0, 8], sizes = [8, 8], strides = [1, 1]} : vector<8x32xbf16> to vector<8x8xbf16>
    %c0_26 = arith.constant 0 : index
    %c1 = arith.constant 1 : index
    %c0_27 = arith.constant 0 : index
    %c0_28 = arith.constant 0 : index
    %37 = vector.load %arg3[%c0_26, %c1, %c0_27, %c0_28] : memref<1x4x8x8xbf16, #tpu.memory_space<vmem>>, vector<1x1x8x8xbf16>
    %38 = vector.shape_cast %37 : vector<1x1x8x8xbf16> to vector<8x8xbf16>
    %cst_29 = arith.constant dense<0.000000e+00> : vector<8x8xf32>
    %39 = tpu.matmul %36, %38, %cst_29 {dimension_numbers = #tpu.dot_dimension_numbers<[1], [0], [0], [1], [0, 0, 1, 1], [], []>} : vector<8x8xbf16>, vector<8x8xbf16>, vector<8x8xf32> -> vector<8x8xf32>
    %cst_30 = arith.constant 0.353553385 : f32
    %40 = vector.broadcast %cst_30 : f32 to vector<8x8xf32>
    %41 = arith.mulf %39, %40 : vector<8x8xf32>
    %cst_31 = arith.constant -1.000000e+09 : f32
    %42 = vector.broadcast %cst_31 : f32 to vector<8x8xf32>
    %43 = arith.select %12, %42, %41 : vector<8x8xi1>, vector<8x8xf32>
    %cst_32 = arith.constant dense<0xFF800000> : vector<8xf32>
    %44 = vector.multi_reduction <maximumf>, %43, %cst_32 [1] : vector<8x8xf32> to vector<8xf32>
    %45 = vector.shape_cast %44 : vector<8xf32> to vector<8x1xf32>
    %46 = vector.broadcast %45 : vector<8x1xf32> to vector<8x8xf32>
    %47 = arith.subf %43, %46 : vector<8x8xf32>
    %48 = math.exp %47 : vector<8x8xf32>
    %cst_33 = arith.constant dense<0.000000e+00> : vector<8xf32>
    %49 = vector.multi_reduction <add>, %48, %cst_33 [1] : vector<8x8xf32> to vector<8xf32>
    %50 = vector.shape_cast %49 : vector<8xf32> to vector<8x1xf32>
    %51 = tpu.reciprocal %50 {approx = true} : vector<8x1xf32> -> vector<8x1xf32>
    %52 = vector.broadcast %51 : vector<8x1xf32> to vector<8x8xf32>
    %53 = arith.mulf %48, %52 : vector<8x8xf32>
    %54 = arith.truncf %53 : vector<8x8xf32> to vector<8x8xbf16>
    %c0_34 = arith.constant 0 : index
    %c1_35 = arith.constant 1 : index
    %c0_36 = arith.constant 0 : index
    %c0_37 = arith.constant 0 : index
    %55 = vector.load %arg4[%c0_34, %c1_35, %c0_36, %c0_37] : memref<1x4x8x8xbf16, #tpu.memory_space<vmem>>, vector<1x1x8x8xbf16>
    %56 = vector.shape_cast %55 : vector<1x1x8x8xbf16> to vector<8x8xbf16>
    %cst_38 = arith.constant dense<0.000000e+00> : vector<8x8xf32>
    %57 = tpu.matmul %54, %56, %cst_38 {dimension_numbers = #tpu.dot_dimension_numbers<[1], [0], [0], [1], [0, 0, 1, 1], [], []>} : vector<8x8xbf16>, vector<8x8xbf16>, vector<8x8xf32> -> vector<8x8xf32>
    %c0_39 = arith.constant 0 : index
    %c8 = arith.constant 8 : index
    %58 = vector.load %arg11[%c0_39, %c8] : memref<8x32xf32, #tpu.memory_space<vmem>>, vector<8x8xf32>
    tpu.vector_store %arg11[%c0_39, %c8], %57 {strides = array<i32>} : memref<8x32xf32, #tpu.memory_space<vmem>>, vector<8x8xf32>,
    %59 = vector.extract_strided_slice %8 {offsets = [0, 16], sizes = [8, 8], strides = [1, 1]} : vector<8x32xbf16> to vector<8x8xbf16>
    %c0_40 = arith.constant 0 : index
    %c2 = arith.constant 2 : index
    %c0_41 = arith.constant 0 : index
    %c0_42 = arith.constant 0 : index
    %60 = vector.load %arg3[%c0_40, %c2, %c0_41, %c0_42] : memref<1x4x8x8xbf16, #tpu.memory_space<vmem>>, vector<1x1x8x8xbf16>
    %61 = vector.shape_cast %60 : vector<1x1x8x8xbf16> to vector<8x8xbf16>
    %cst_43 = arith.constant dense<0.000000e+00> : vector<8x8xf32>
    %62 = tpu.matmul %59, %61, %cst_43 {dimension_numbers = #tpu.dot_dimension_numbers<[1], [0], [0], [1], [0, 0, 1, 1], [], []>} : vector<8x8xbf16>, vector<8x8xbf16>, vector<8x8xf32> -> vector<8x8xf32>
    %cst_44 = arith.constant 0.353553385 : f32
    %63 = vector.broadcast %cst_44 : f32 to vector<8x8xf32>
    %64 = arith.mulf %62, %63 : vector<8x8xf32>
    %cst_45 = arith.constant -1.000000e+09 : f32
    %65 = vector.broadcast %cst_45 : f32 to vector<8x8xf32>
    %66 = arith.select %12, %65, %64 : vector<8x8xi1>, vector<8x8xf32>
    %cst_46 = arith.constant dense<0xFF800000> : vector<8xf32>
    %67 = vector.multi_reduction <maximumf>, %66, %cst_46 [1] : vector<8x8xf32> to vector<8xf32>
    %68 = vector.shape_cast %67 : vector<8xf32> to vector<8x1xf32>
    %69 = vector.broadcast %68 : vector<8x1xf32> to vector<8x8xf32>
    %70 = arith.subf %66, %69 : vector<8x8xf32>
    %71 = math.exp %70 : vector<8x8xf32>
    %cst_47 = arith.constant dense<0.000000e+00> : vector<8xf32>
    %72 = vector.multi_reduction <add>, %71, %cst_47 [1] : vector<8x8xf32> to vector<8xf32>
    %73 = vector.shape_cast %72 : vector<8xf32> to vector<8x1xf32>
    %74 = tpu.reciprocal %73 {approx = true} : vector<8x1xf32> -> vector<8x1xf32>
    %75 = vector.broadcast %74 : vector<8x1xf32> to vector<8x8xf32>
    %76 = arith.mulf %71, %75 : vector<8x8xf32>
    %77 = arith.truncf %76 : vector<8x8xf32> to vector<8x8xbf16>
    %c0_48 = arith.constant 0 : index
    %c2_49 = arith.constant 2 : index
    %c0_50 = arith.constant 0 : index
    %c0_51 = arith.constant 0 : index
    %78 = vector.load %arg4[%c0_48, %c2_49, %c0_50, %c0_51] : memref<1x4x8x8xbf16, #tpu.memory_space<vmem>>, vector<1x1x8x8xbf16>
    %79 = vector.shape_cast %78 : vector<1x1x8x8xbf16> to vector<8x8xbf16>
    %cst_52 = arith.constant dense<0.000000e+00> : vector<8x8xf32>
    %80 = tpu.matmul %77, %79, %cst_52 {dimension_numbers = #tpu.dot_dimension_numbers<[1], [0], [0], [1], [0, 0, 1, 1], [], []>} : vector<8x8xbf16>, vector<8x8xbf16>, vector<8x8xf32> -> vector<8x8xf32>
    %c0_53 = arith.constant 0 : index
    %c16 = arith.constant 16 : index
    %81 = vector.load %arg11[%c0_53, %c16] : memref<8x32xf32, #tpu.memory_space<vmem>>, vector<8x8xf32>
    tpu.vector_store %arg11[%c0_53, %c16], %80 {strides = array<i32>} : memref<8x32xf32, #tpu.memory_space<vmem>>, vector<8x8xf32>,
    %82 = vector.extract_strided_slice %8 {offsets = [0, 24], sizes = [8, 8], strides = [1, 1]} : vector<8x32xbf16> to vector<8x8xbf16>
    %c0_54 = arith.constant 0 : index
    %c3 = arith.constant 3 : index
    %c0_55 = arith.constant 0 : index
    %c0_56 = arith.constant 0 : index
    %83 = vector.load %arg3[%c0_54, %c3, %c0_55, %c0_56] : memref<1x4x8x8xbf16, #tpu.memory_space<vmem>>, vector<1x1x8x8xbf16>
    %84 = vector.shape_cast %83 : vector<1x1x8x8xbf16> to vector<8x8xbf16>
    %cst_57 = arith.constant dense<0.000000e+00> : vector<8x8xf32>
    %85 = tpu.matmul %82, %84, %cst_57 {dimension_numbers = #tpu.dot_dimension_numbers<[1], [0], [0], [1], [0, 0, 1, 1], [], []>} : vector<8x8xbf16>, vector<8x8xbf16>, vector<8x8xf32> -> vector<8x8xf32>
    %cst_58 = arith.constant 0.353553385 : f32
    %86 = vector.broadcast %cst_58 : f32 to vector<8x8xf32>
    %87 = arith.mulf %85, %86 : vector<8x8xf32>
    %cst_59 = arith.constant -1.000000e+09 : f32
    %88 = vector.broadcast %cst_59 : f32 to vector<8x8xf32>
    %89 = arith.select %12, %88, %87 : vector<8x8xi1>, vector<8x8xf32>
    %cst_60 = arith.constant dense<0xFF800000> : vector<8xf32>
    %90 = vector.multi_reduction <maximumf>, %89, %cst_60 [1] : vector<8x8xf32> to vector<8xf32>
    %91 = vector.shape_cast %90 : vector<8xf32> to vector<8x1xf32>
    %92 = vector.broadcast %91 : vector<8x1xf32> to vector<8x8xf32>
    %93 = arith.subf %89, %92 : vector<8x8xf32>
    %94 = math.exp %93 : vector<8x8xf32>
    %cst_61 = arith.constant dense<0.000000e+00> : vector<8xf32>
    %95 = vector.multi_reduction <add>, %94, %cst_61 [1] : vector<8x8xf32> to vector<8xf32>
    %96 = vector.shape_cast %95 : vector<8xf32> to vector<8x1xf32>
    %97 = tpu.reciprocal %96 {approx = true} : vector<8x1xf32> -> vector<8x1xf32>
    %98 = vector.broadcast %97 : vector<8x1xf32> to vector<8x8xf32>
    %99 = arith.mulf %94, %98 : vector<8x8xf32>
    %100 = arith.truncf %99 : vector<8x8xf32> to vector<8x8xbf16>
    %c0_62 = arith.constant 0 : index
    %c3_63 = arith.constant 3 : index
    %c0_64 = arith.constant 0 : index
    %c0_65 = arith.constant 0 : index
    %101 = vector.load %arg4[%c0_62, %c3_63, %c0_64, %c0_65] : memref<1x4x8x8xbf16, #tpu.memory_space<vmem>>, vector<1x1x8x8xbf16>
    %102 = vector.shape_cast %101 : vector<1x1x8x8xbf16> to vector<8x8xbf16>
    %cst_66 = arith.constant dense<0.000000e+00> : vector<8x8xf32>
    %103 = tpu.matmul %100, %102, %cst_66 {dimension_numbers = #tpu.dot_dimension_numbers<[1], [0], [0], [1], [0, 0, 1, 1], [], []>} : vector<8x8xbf16>, vector<8x8xbf16>, vector<8x8xf32> -> vector<8x8xf32>
    %c0_67 = arith.constant 0 : index
    %c24 = arith.constant 24 : index
    %104 = vector.load %arg11[%c0_67, %c24] : memref<8x32xf32, #tpu.memory_space<vmem>>, vector<8x8xf32>
    tpu.vector_store %arg11[%c0_67, %c24], %103 {strides = array<i32>} : memref<8x32xf32, #tpu.memory_space<vmem>>, vector<8x8xf32>,
    %c0_68 = arith.constant 0 : index
    %c0_69 = arith.constant 0 : index
    %105 = vector.load %arg11[%c0_68, %c0_69] : memref<8x32xf32, #tpu.memory_space<vmem>>, vector<8x32xf32>
    %106 = arith.truncf %105 : vector<8x32xf32> to vector<8x32xbf16>
    %c0_70 = arith.constant 0 : index
    %c0_71 = arith.constant 0 : index
    %107 = vector.load %arg8[%c0_70, %c0_71] : memref<32x32xbf16, #tpu.memory_space<vmem>>, vector<32x32xbf16>
    %cst_72 = arith.constant dense<0.000000e+00> : vector<8x32xf32>
    %108 = tpu.matmul %106, %107, %cst_72 {dimension_numbers = #tpu.dot_dimension_numbers<[1], [0], [0], [1], [0, 0, 1, 1], [], []>} : vector<8x32xbf16>, vector<32x32xbf16>, vector<8x32xf32> -> vector<8x32xf32>
    %c0_73 = arith.constant 0 : index
    %c0_74 = arith.constant 0 : index
    %109 = vector.load %arg9[%c0_73, %c0_74] : memref<1x32xf32, #tpu.memory_space<vmem>>, vector<1x32xf32>
    %110 = vector.broadcast %109 : vector<1x32xf32> to vector<8x32xf32>
    %111 = arith.addf %108, %110 : vector<8x32xf32>
    %c0_75 = arith.constant 0 : index
    %c0_76 = arith.constant 0 : index
    %c0_77 = arith.constant 0 : index
    %112 = vector.load %arg10[%c0_75, %c0_76, %c0_77] : memref<1x8x32xf32, #tpu.memory_space<vmem>>, vector<1x8x32xf32>
    %113 = vector.shape_cast %112 : vector<1x8x32xf32> to vector<8x32xf32>
    %114 = vector.shape_cast %111 : vector<8x32xf32> to vector<1x8x32xf32>
    tpu.vector_store %arg10[%c0_75, %c0_76, %c0_77], %114 {strides = array<i32>} : memref<1x8x32xf32, #tpu.memory_space<vmem>>, vector<1x8x32xf32>,
    return
  }
  func.func @transform_0(%arg0: i32, %arg1: i32) -> (i32, i32, i32) {
    %c0_i32 = arith.constant 0 : i32
    %c0_i32_0 = arith.constant 0 : i32
    return %arg0, %arg1, %c0_i32 : i32, i32, i32
  }
  func.func @transform_1(%arg0: i32, %arg1: i32) -> (i32, i32, i32, i32) {
    %c0_i32 = arith.constant 0 : i32
    %c0_i32_0 = arith.constant 0 : i32
    %c0_i32_1 = arith.constant 0 : i32
    %c0_i32_2 = arith.constant 0 : i32
    return %arg0, %c0_i32, %c0_i32_0, %c0_i32_1 : i32, i32, i32, i32
  }
  func.func @transform_2(%arg0: i32, %arg1: i32) -> (i32, i32, i32, i32) {
    %c0_i32 = arith.constant 0 : i32
    %c0_i32_0 = arith.constant 0 : i32
    %c0_i32_1 = arith.constant 0 : i32
    %c0_i32_2 = arith.constant 0 : i32
    return %arg0, %c0_i32, %c0_i32_0, %c0_i32_1 : i32, i32, i32, i32
  }
  func.func @transform_3(%arg0: i32, %arg1: i32) -> (i32, i32, i32, i32) {
    %c0_i32 = arith.constant 0 : i32
    %c0_i32_0 = arith.constant 0 : i32
    %c0_i32_1 = arith.constant 0 : i32
    return %arg0, %c0_i32, %arg1, %c0_i32_0 : i32, i32, i32, i32
  }
  func.func @transform_4(%arg0: i32, %arg1: i32) -> (i32, i32) {
    %c0_i32 = arith.constant 0 : i32
    %c0_i32_0 = arith.constant 0 : i32
    %c0_i32_1 = arith.constant 0 : i32
    return %c0_i32, %c0_i32_0 : i32, i32
  }
  func.func @transform_5(%arg0: i32, %arg1: i32) -> (i32, i32) {
    %c0_i32 = arith.constant 0 : i32
    %c0_i32_0 = arith.constant 0 : i32
    %c0_i32_1 = arith.constant 0 : i32
    return %c0_i32, %c0_i32_0 : i32, i32
  }
  func.func @transform_6(%arg0: i32, %arg1: i32) -> (i32, i32) {
    %c0_i32 = arith.constant 0 : i32
    %c0_i32_0 = arith.constant 0 : i32
    %c0_i32_1 = arith.constant 0 : i32
    return %c0_i32, %c0_i32_0 : i32, i32
  }
  func.func @transform_7(%arg0: i32, %arg1: i32) -> (i32, i32) {
    %c0_i32 = arith.constant 0 : i32
    %c0_i32_0 = arith.constant 0 : i32
    %c0_i32_1 = arith.constant 0 : i32
    return %c0_i32, %c0_i32_0 : i32, i32
  }
  func.func @transform_8(%arg0: i32, %arg1: i32) -> (i32, i32, i32) {
    %c0_i32 = arith.constant 0 : i32
    %c0_i32_0 = arith.constant 0 : i32
    return %arg0, %arg1, %c0_i32 : i32, i32, i32
  }
}

</mosaic_0001>

<bundles_post_ra>
// kernel: tpu_custom_call.1
= control target key start
LH: loop header
LB: loop body
LE: loop exit
PB: predicated region body
PF: predicated region fallthrough
CT: control target
= control target key end

     0   :  { %s2165_s0 = inlined_call_operand.hbm [shape: f32[2,8,32], index: 0, kind: input, shape index: {}]   ;;  %s2166_s1 = inlined_call_operand.hbm [shape: bf16[2,4,8,8], index: 1, kind: input, shape index: {}]   ;;  %s2167_s2 = inlined_call_operand.hbm [shape: bf16[2,4,8,8], index: 2, kind: input, shape index: {}]   ;;  %s2168_s3 = inlined_call_operand.vmem [shape: s8[2,1,8,8], index: 3, kind: input, shape index: {}]   ;;  %s2169_s4 = inlined_call_operand.hbm [shape: bf16[32,32], index: 4, kind: input, shape index: {}]   ;;  %s2170_s5 = inlined_call_operand.vmem [shape: f32[1,32], index: 5, kind: input, shape index: {}]   ;;  %s2171_s6 = inlined_call_operand.vmem [shape: bf16[32,32], index: 6, kind: input, shape index: {}]   ;;  %s2172_s7 = inlined_call_operand.vmem [shape: f32[1,32], index: 7, kind: input, shape index: {}]   ;;  %s2173_s8 = inlined_call_operand.hbm [shape: f32[2,8,32], index: 8, kind: output, shape index: {}]  }
   0x1   :  { %2198 = sst [smem:[#allocation24_spill]] %s2166_s1 }
   0x2   :  { %2199 = sst [smem:[#allocation25_spill]] %s2172_s7 }
   0x3   :  { %2200 = sst [smem:[#allocation26_spill]] %s2173_s8 }
   0x4   :  { %13 = vsyncpa [#allocation4], 0 }
   0x5   :  { %15 = vsyncpa [#allocation4 + $0x1], 0 }
   0x6   :  { %16 = vsyncpa [#allocation7], 0 }
   0x7   :  { %18 = vsyncpa [#allocation7 + $0x1], 0 }
   0x8   :  { %19 = vsyncpa [#allocation10], 0 }
   0x9   :  { %20 = vsyncpa [#allocation5], 0 }
   0xa   :  { %22 = vsyncpa [#allocation5 + $0x1], 0  ;;  %s1753_s27 = smov 0   ;;  %s1755_s28 = smov 0  }
   0xb   :  { %s1757_s29 = smov 0   ;;  %s1759_s30 = smov 0  }
   0xc   :  { %s1761_s9 = smov 0   ;;  %s1763_s10 = smov 0  }
   0xd LB: > { %2201 = sst [smem:[#allocation16_spill]] %s1670_s27  ;;  %s40_s11 = sadd.s32 1, %s1686_s9  ;;  %s1690_s10 = sphi %s1763_s10, %s28_s10   ;;  %s1686_s9 = sphi %s1761_s9, %s2241_s9   ;;  %s1682_s30 = sphi %s1759_s30, %s2240_s30   ;;  %s1678_s29 = sphi %s1757_s29, %s2239_s29   ;;  %s1674_s28 = sphi %s1755_s28, %s2243_s28   ;;  %s1670_s27 = sphi %s1753_s27, %s2242_s27  }
   0xe   : > { %2202 = sst [smem:[#allocation17_spill]] %s1678_s29  ;;  %s49_s12 = sadd.s32 1, %s1678_s29 }
   0xf   : > { %2203 = sst [smem:[#allocation18_spill]] %s1686_s9  ;;  %p42_p0 = scmp.ge.s32.totalorder %s40_s11, 2 }
  0x10   : > { %2204 = sst [smem:[#allocation19_spill]] %s1690_s10  ;;  %p2175_p1 = scmp.ne.s32.totalorder %s1678_s29, %s1674_s28 }
  0x11   : > { %p57_p2 = scmp.eq.s32.totalorder %s1690_s10, 0  ;;  %s2245_s11 = smov (%p42_p0, %s40_s11), 0 }
  0x12   : > { %2205 = sst [smem:[#allocation20_spill]] %s2245_s11  ;;  %s44_s13 = ssub.s32 %s1686_s9, %s2245_s11 }
  0x13   : > { %p58_p3 = por %p57_p2, %p2175_p1  ;;  %p47_p5 = scmp.eq.s32.totalorder %s44_s13, 0 }
  0x14   : > { %p1399_p6 = scmp.lt.s32.totalorder %s1690_s10, 2  ;;  %s1798_s14 = sand.u32 1, %s1678_s29  }
  0x15   : > { %s319_s15 = sand.u32 1, %s1690_s10   ;;  %s2174_s18 = sshll.u32 %s1798_s14, 4 }
  0x16   : > { %s1802_s16 = scalar_select %p47_p5, %s1678_s29, %s49_s12  }
  0x17   : > { %p1804_p7 = pnand %p1399_p6, %p58_p3  ;;  %s1280_s19 = sshll.u32 %s1686_s9, 8 }
  0x18   : > { %2206 = sst [smem:[#allocation21_spill]] %s1802_s16  ;;  %s2208_s1 = sld [smem:[#allocation24_spill]] }
  0x19   : > { %s2207_s17 = scalar_select %p1804_p7, 1, 0 }
  0x1a   : > { %s323_s23 = scalar_lea.vmem [#allocation6], %s2174_s18  ;;  %s1821_s25 = scalar_lea.sflag [#allocation7], %s319_s15 }
  0x1b   : > { %s330_s24 = sshll.u32 %s323_s23, 4  ;;  %p1827_p9 = pneg %p1804_p7  ;;  %s1819_s24 = int_to_ptr.vmem [resolvable:$true] %s330_s24 }
  0x1d   : > { %s2209_s12 = scalar_select %p1827_p9, 1, 0 }
  0x1e   : > { %s1815_s22 = scalar_lea.hbm %s2208_s1, %s1280_s19  ;;  %s1487_s21 = scalar_lea.hbm %s2208_s1, 512 }
  0x1f   : > { %s1482_s26 = scalar_lea.hbm %s1815_s22, 256  ;;  %p1488_p12 = scmp.lt.u32.totalorder %s1815_s22, %s2208_s1 }
  0x20   : > { %p1483_p8 = scmp.ne.s32.totalorder %s1815_s22, %s1482_s26  ;;  %p1489_p13 = scmp.lt.u32.totalorder %s1487_s21, %s1482_s26 }
  0x21   : > { %p1491_p2 = scmp.lt.u32.totalorder %s1482_s26, %s1815_s22 }
  0x22   : > { %p1485_p10 = pnand %p1827_p9, %p1483_p8  ;;  %p1490_p0 = por %p1489_p13, %p1488_p12 }
  0x24   : > { %p1486_p11 = pneg %p1485_p10  ;;  %p1492_p3 = por %p1491_p2, %p1490_p0 }
  0x26   : > { %p1493_p5 = pnand %p1492_p3, %p1486_p11 }
  0x28   : > { %1496 = shalt.err (!%p1493_p5)
}
  0x29   : > { %s1497_s15 = scalar_lea.vmem %s1819_s24, 256  ;;  %s1692_s13 = smov [#allocation6]  }
  0x2a   : > { %p1498_p6 = scmp.ne.s32.totalorder %s1819_s24, %s1497_s15  ;;  %s1502_s20 = sshll.u32 %s1692_s13, 4  ;;  %s1503_s20 = int_to_ptr.vmem [resolvable:$false] %s1502_s20 }
  0x2b   : > { %s1504_s18 = scalar_lea.vmem %s1503_s20, 512  ;;  %p1505_p4 = scmp.lt.s32.totalorder %s1819_s24, %s1503_s20 }
  0x2c   : > { %p1500_p8 = pnand %p1498_p6, %p1827_p9  ;;  %p1506_p1 = scmp.lt.s32.totalorder %s1504_s18, %s1497_s15 }
  0x2e   : > { %p1501_p10 = pneg %p1500_p8  ;;  %p1507_p12 = por %p1506_p1, %p1505_p4 }
  0x30   : > { %p1508_p13 = pnand %p1507_p12, %p1501_p10 }
  0x32   : > { %1511 = shalt.err (!%p1508_p13)
}
  0x33   : > { %s2177_s26 = smov 64   ;;  %s2179_s21 = smov 4  }
  0x34   : > { %1390 = dma.hbm_to_vmem [thread:$0]  (!%p1804_p7), %s1815_s22, 256, %s1819_s24, %s1821_s25, %s2177_s26, %s2177_s26, %s2179_s21  }
  0x35   : > { %s1859_s13 = scalar_lea.hbm %s2167_s2, %s1280_s19  ;;  %s2210_s20 = sshll.u32 %s1798_s14, 4 }
  0x36   : > { %s344_s18 = scalar_lea.vmem [#allocation8], %s2210_s20  ;;  %s1864_s11 = sadd.s32 4294967295, %s1690_s10  }
  0x37   : > { %s351_s1 = sshll.u32 %s344_s18, 4  ;;  %s1235_s16 = sadd.s32 4294967294, %s1690_s10   ;;  %s1894_s1 = int_to_ptr.vmem [resolvable:$true] %s351_s1 }
  0x38   : > { %p62_p1 = scmp.ne.s32.totalorder %s1674_s28, %s1670_s27  ;;  %p2190_p4 = scmp.eq.s32.totalorder %s1864_s11, 0 }
  0x39   : > { %p252_p11 = scmp.eq.s32.totalorder %s1864_s11, 1  ;;  %p258_p0 = scmp.eq.s32.totalorder %s1235_s16, 1 }
  0x3a   : > { %p1236_p2 = scmp.ge.s32.totalorder %s1690_s10, 1  ;;  %p1874_p3 = por %p2190_p4, %p62_p1 }
  0x3b   : > { %p2212_p5 = scmp.ne.s32.totalorder %s1678_s29, %s1674_s28  ;;  %p1885_p8 = por %p258_p0, %p62_p1 }
  0x3c   : > { %s2211_s19 = scalar_select %p1874_p3, 1, 0 }
  0x3d   : > { %p1881_p6 = por %p252_p11, %p2212_p5  ;;  %p265_p10 = scmp.lt.s32.totalorder %s1690_s10, 3 }
  0x3e   : > { %s2215_s24 = scalar_select %p1885_p8, 1, 0 }
  0x3f   : > { %s2213_s22 = scalar_select %p1881_p6, 1, 0 }
  0x40   : > { %2216 = sst [smem:[#allocation23_spill]] %s2215_s24  ;;  %p1890_p12 = pnand %p1236_p2, %p265_p10 }
  0x41   : > { %2214 = sst [smem:[#allocation22_spill]] %s2213_s22  ;;  %s1695_s16 = smov [#allocation9]  }
  0x42   : > { %s2217_s23 = scalar_select %p1890_p12, 1, 0 }
  0x43   : > { %s277_s15 = sshll.u32 %s1695_s16, 4  ;;  %p1380_p13 = pneg %p1890_p12  ;;  %s1896_s15 = int_to_ptr.vmem [resolvable:$true] %s277_s15 }
  0x44   : > { %s1239_s20 = sshll.u32 %s1798_s14, 3  ;;  %s1240_s18 = sshll.u32 %s1686_s9, 7 }
  0x45   : > { %p1904_p1 = pnand %p1380_p13, %p2190_p4  ;;  %s1911_s10 = scalar_lea.hbm %s2165_s0, %s1240_s18 }
  0x46   : > { %s304_s16 = scalar_lea.vmem [#allocation3], %s1239_s20  ;;  %s1512_s22 = scalar_lea.hbm %s2169_s4, 256 }
  0x47   : > { %s312_s24 = sshll.u32 %s304_s16, 4  ;;  %p1513_p11 = scmp.ne.s32.totalorder %s2169_s4, %s1512_s22  ;;  %s1913_s24 = int_to_ptr.vmem [resolvable:$true] %s312_s24 }
  0x48   : > { %p1514_p0 = pneg %p1904_p1  ;;  %p1519_p10 = scmp.lt.u32.totalorder %s1512_s22, %s2169_s4 }
  0x4a   : > { %p1515_p2 = pnand %p1514_p0, %p1513_p11 }
  0x4c   : > { %p1516_p5 = pneg %p1515_p2 }
  0x4e   : > { %p1521_p13 = pnand %p1519_p10, %p1516_p5 }
  0x50   : > { %1524 = shalt.err (!%p1521_p13)
}
  0x51   : > { %s1525_s20 = scalar_lea.vmem %s1896_s15, 256  ;;  %p1533_p3 = scmp.lt.s32.totalorder %s1896_s15, %s1896_s15 }
  0x52   : > { %p1526_p4 = scmp.ne.s32.totalorder %s1896_s15, %s1525_s20  ;;  %p1534_p12 = scmp.lt.s32.totalorder %s1525_s20, %s1525_s20 }
  0x54   : > { %p1528_p8 = pnand %p1526_p4, %p1514_p0  ;;  %p1535_p7 = por %p1534_p12, %p1533_p3 }
  0x56   : > { %p1529_p6 = pneg %p1528_p8 }
  0x58   : > { %p1536_p9 = pnand %p1535_p7, %p1529_p6 }
  0x5a   : > { %1539 = shalt.err (!%p1536_p9)
}
  0x5b   : > { %s2219_s7 = smov 4   ;;  %s2220_s8 = smov 64  }
  0x5c   : > { %1383 = dma.hbm_to_vmem [thread:$0]  (!%p1904_p1), %s2169_s4, 256, %s1896_s15, [#allocation10], %s2220_s8, %s2220_s8, %s2219_s7  }
  0x5d   : > { %s301_s22 = scalar_lea.sflag [#allocation4], %s1798_s14  ;;  %s1540_s18 = scalar_lea.hbm %s1911_s10, 128 }
  0x5e   : > { %p1541_p7 = scmp.ne.s32.totalorder %s1911_s10, %s1540_s18  ;;  %p2221_p9 = scmp.ne.s32.totalorder %s2209_s12, 0 }
  0x5f   : > { %s1545_s29 = scalar_lea.hbm %s2165_s0, 256  ;;  %p1546_p6 = scmp.lt.u32.totalorder %s1911_s10, %s2165_s0 }
  0x60   : > { %p1543_p4 = pnand %p1541_p7, %p2221_p9  ;;  %p1547_p8 = scmp.lt.u32.totalorder %s1545_s29, %s1540_s18 }
  0x61   : > { %p1549_p11 = scmp.lt.u32.totalorder %s1540_s18, %s1911_s10 }
  0x62   : > { %p1544_p3 = pneg %p1543_p4  ;;  %p1548_p12 = por %p1547_p8, %p1546_p6 }
  0x64   : > { %p1550_p0 = por %p1549_p11, %p1548_p12 }
  0x66   : > { %p1551_p2 = pnand %p1550_p0, %p1544_p3 }
  0x68   : > { %1554 = shalt.err (!%p1551_p2)
}
  0x69   : > { %s1555_s14 = scalar_lea.vmem %s1913_s24, 128  ;;  %s1696_s15 = smov [#allocation3]  }
  0x6a   : > { %p1556_p1 = scmp.ne.s32.totalorder %s1913_s24, %s1555_s14  ;;  %s1560_s27 = sshll.u32 %s1696_s15, 4  ;;  %s1561_s27 = int_to_ptr.vmem [resolvable:$false] %s1560_s27 }
  0x6b   : > { %s1562_s9 = scalar_lea.vmem %s1561_s27, 256  ;;  %p1563_p13 = scmp.lt.s32.totalorder %s1913_s24, %s1561_s27 }
  0x6c   : > { %p1558_p5 = pnand %p1556_p1, %p2221_p9  ;;  %p1564_p7 = scmp.lt.s32.totalorder %s1562_s9, %s1555_s14 }
  0x6e   : > { %p1559_p10 = pneg %p1558_p5  ;;  %p1565_p4 = por %p1564_p7, %p1563_p13 }
  0x70   : > { %p1566_p6 = pnand %p1565_p4, %p1559_p10 }
  0x72   : > { %1569 = shalt.err (!%p1566_p6)
}
  0x73   : > { %p2222_p3 = scmp.ne.s32.totalorder %s2207_s17, 0  ;;  %s1570_s18 = scalar_lea.hbm %s1859_s13, 256 }
  0x74   : > { %p1571_p8 = scmp.ne.s32.totalorder %s1859_s13, %s1570_s18  ;;  %s1575_s29 = scalar_lea.hbm %s2167_s2, 512 }
  0x75   : > { %1387 = dma.hbm_to_vmem [thread:$0]  (!%p2222_p3), %s1911_s10, 128, %s1913_s24, %s301_s22  }
  0x76   : > { %p1573_p12 = pnand %p1571_p8, %p2221_p9  ;;  %p1576_p0 = scmp.lt.u32.totalorder %s1859_s13, %s2167_s2 }
  0x77   : > { %p1577_p2 = scmp.lt.u32.totalorder %s1575_s29, %s1570_s18  ;;  %p1579_p5 = scmp.lt.u32.totalorder %s1570_s18, %s1859_s13 }
  0x78   : > { %p1574_p11 = pneg %p1573_p12 }
  0x79   : > { %p1578_p1 = por %p1577_p2, %p1576_p0 }
  0x7b   : > { %p1580_p10 = por %p1579_p5, %p1578_p1 }
  0x7d   : > { %p1581_p13 = pnand %p1580_p10, %p1574_p11 }
  0x7f   : > { %1584 = shalt.err (!%p1581_p13)
}
  0x80   : > { %s1585_s10 = scalar_lea.vmem %s1894_s1, 256  ;;  %s1697_s24 = smov [#allocation8]  }
  0x81   : > { %p1586_p7 = scmp.ne.s32.totalorder %s1894_s1, %s1585_s10  ;;  %s1590_s22 = sshll.u32 %s1697_s24, 4  ;;  %s1591_s22 = int_to_ptr.vmem [resolvable:$false] %s1590_s22 }
  0x82   : > { %s1592_s14 = scalar_lea.vmem %s1591_s22, 512  ;;  %p1593_p8 = scmp.lt.s32.totalorder %s1894_s1, %s1591_s22 }
  0x83   : > { %p1588_p4 = pnand %p1586_p7, %p2221_p9  ;;  %p1594_p12 = scmp.lt.s32.totalorder %s1592_s14, %s1585_s10 }
  0x85   : > { %p1589_p6 = pneg %p1588_p4  ;;  %p1595_p0 = por %p1594_p12, %p1593_p8 }
  0x87   : > { %p1596_p2 = pnand %p1595_p0, %p1589_p6 }
  0x89   : > { %1599 = shalt.err (!%p1596_p2)
}
  0x8a   : > { %1393 = dma.hbm_to_vmem [thread:$0]  (!%p2222_p3), %s1859_s13, 256, %s1894_s1, %s1821_s25, %s2220_s8, %s2220_s8, %s2219_s7  }
  0x8b   : > { %p2223_p9 = scmp.ne.s32.totalorder %s2217_s23, 0 }
  0x8c   : > { %s1989_s12 = sand.u32 (!%p2223_p9), 1, %s1674_s28   ;;  %p2224_p11 = scmp.ne.s32.totalorder (!%p2223_p9), %s2211_s19, 0 }
  0x8d   : > { %373 = sbr.rel (%p2223_p9) target bundleno = 1608 (0x648), region = 52  ;;  %s1248_s15 = sshll.u32 (!%p2223_p9), %s1989_s12, 3 }
  0x8e   : > { %s376_s27 = scalar_lea.sflag (!%p2223_p9), [#allocation4], %s1989_s12  ;;  %s379_s17 = scalar_lea.vmem (!%p2223_p9), [#allocation3], %s1248_s15 }
  0x94   : > { %1653 = dma.done.wait (%p2224_p11), %s376_s27, 128  }
  0x95   : > { %1655 = vsyncadd (%p2224_p11), %s376_s27, 4294967168  ;;  %s384_s1 = sand.u32 1, %s1864_s11   ;;  %s1249_s25 = sshll.u32 %s1989_s12, 4 }
  0x96   : > { %s385_s13 = scalar_lea.sflag [#allocation7], %s384_s1  ;;  %s2001_s23 = scalar_lea.vmem [#allocation6], %s1249_s25 }
  0x97   : > { %1657 = dma.done.wait (%p2224_p11), %s385_s13, 512  }
  0x98   : > { %1659 = vsyncadd (%p2224_p11), %s385_s13, 4294966784  ;;  %s2007_s7 = scalar_lea.vmem [#allocation8], %s1249_s25  ;;  %p2225_p3 = scmp.eq.s32.totalorder %s1864_s11, 0 }
  0x9a   : > { %1661 = dma.done.wait (%p2225_p3), [#allocation10], 256   ;;  %p2226_p1 = pmov %p2225_p3 }
  0x9b   : > { %v1698_v0 = vmov 0.0   ;;  %vm1699_vm0 = vmmov 0   ;;  %v1462_v1 = vld [vmem:[#allocation9] sm:$0xff]   ;;  %v1463_v2 = vld [vmem:[#allocation9 + $0x8] sm:$0xff]   ;;  %v461_v3 = vld [vmem:[%s379_s17] sm:$0xff]  ;;  %vm486_vm1 = vcmask 261120  }
  0x9c   : > { %1663 = vsyncadd (%p2226_p1), [#allocation10], 4294967040  ;;  %1304 = vmatprep.subr.bf16.mxu0 %v1698_v0  ;;  %1308 = vmatprep.mubr.msk.bf16.mxu0 %vm1699_vm0, %v1698_v0  ;;  %v462_v4 = vpack.c.bf16 %v461_v3, %v461_v3  ;;  %v533_v5 = vld [vmem:[%s2001_s23] sm:$0xf]  ;;  %vm538_vm2 = vcmask 1043456   ;;  %vm534_vm3 = vcmask 64512  }
  0x9d   : > { %1312 = vmatprep.subr.bf16.mxu1 %v1698_v0  ;;  %1314 = vmatprep.mubr.msk.bf16.mxu1 %vm1699_vm0, %v1698_v0  ;;  %v540_v6 = vsel %vm538_vm2, %v533_v5, 0  ;;  %v1260_v7 = vld [vmem:[%s2001_s23 + $0x4] sm:$0xf]  ;;  %v1254_v9 = vld [vmem:[%s2170_s5] ss:$0 sm:$0xff]  ;;  %s1700_s8 = smov 104  }
  0x9e   : > { %1305 = vmatpush3.bf16.msra.mxu0 %v1462_v1  ;;  %1313 = vmatpush3.bf16.msra.mxu1 %v540_v6  ;;  %v656_v8 = vsel %vm538_vm2, %v1260_v7, 0  ;;  %s1701_s9 = smov 120   ;;  %s1702_s18 = smov 112   ;;  %v1264_v16 = vld [vmem:[%s2001_s23 + $0x8] sm:$0xf]  ;;  %v1703_v24 = vmov 0  }
  0x9f   : > { %1306 = vmatprep.subr.bf16.mxu0 %v1698_v0  ;;  %1318 = vmatprep.subr.bf16.mxu1 %v1698_v0  ;;  %v774_v17 = vsel %vm538_vm2, %v1264_v16, 0  ;;  %v1268_v19 = vld [vmem:[%s2001_s23 + $0xc] sm:$0xf]  ;;  %p451_p5 = scmp.lt.s32.totalorder %s1682_s30, 1  ;;  %v599_v61 = vld [vmem:[%s2007_s7] sm:$0xf] }
  0xa0   : > { %v892_v20 = vsel %vm538_vm2, %v1268_v19, 0  ;;  %v604_v62 = vsel %vm538_vm2, %v599_v61, 0  ;;  %s1704_s10 = smov 8   ;;  %s1705_s17 = smov 16   ;;  %vm764_vm6 = vcmask 130112   ;;  %vm882_vm7 = vcmask 195712  }
  0xa1   : > { %s452_s26 = scalar_select %p451_p5, %s1682_s30, 1  ;;  %vm1000_vm8 = vcmask 261312  }
  0xa2   : > { %1307 = vmatpush3.bf16.msra.mxu0 %v1463_v2  ;;  %s1706_s1 = smov 24   ;;  %s2229_s23 = sld [smem:[#allocation25_spill]] }
  0xa3   : > { %1324 = vmatprep.subr.bf16.mxu0 %v1698_v0  ;;  %s1253_s16 = sshll.u32 %s452_s26, 1  ;;  %s1277_s11 = sshll.u32 %s1682_s30, 7 }
  0xa4   : > { %s457_s20 = scalar_lea.vmem %s2168_s3, %s1253_s16  ;;  %s450_s19 = scalar_lea.vmem [#allocation11], %s1248_s15 }
  0xa5   : > { %1309 = vmatmul.mubr.msk.bf16.vlgmr.msra.gmra.mrb[0].mxu0 %vm486_vm1, %v462_v4  ;;  %v531_v23 = vld [vmem:[%s457_s20] sm:$0x3]  ;;  %s2231_s26 = sld [smem:[#allocation26_spill]]  ;;  %s1072_s30 = scalar_lea.sflag [#allocation5], %s1989_s12 }
  0xa6   : > { %1326 = vmatprep.mubr.msk.bf16.mxu0 %vm1699_vm0, %v1698_v0  ;;  %1325 = vmatpush3.bf16.msra.mxu0 %v656_v8  ;;  %vm532_vm4 = vnez %v531_v23  ;;  %s1707_s29 = smov [#allocation11]  }
  0xa7   : > { %1336 = vmatprep.subr.bf16.mxu0 %v1698_v0  ;;  %v583_v25 = vsel %vm532_vm4, 16843009, %v1703_v24  ;;  %v1266_v24 = vld [vmem:[%s2007_s7 + $0x8] sm:$0xf]  ;;  %s1604_s21 = sshll.u32 %s1707_s29, 4  ;;  %s1605_s21 = int_to_ptr.vmem [resolvable:$false] %s1604_s21 }
  0xa8   : > { %v584_v26 = vunpack.c.0.s8 %v583_v25  ;;  %s1606_s20 = scalar_lea.vmem %s1605_s21, 256 }
  0xaa   : > { %vm2056_vm5 = vcmp.ne.s32.totalorder %v584_v26, 0 }
  0xab   : > { %s2115_s16 = scalar_lea.hbm %s2231_s26, %s1277_s11 }
 0x178   : > { %v524_v10 = vpop.f32.mrb[0].mxu0 }
 0x179   : > { %v525_v11 = vadd.f32 %v1254_v9, %v524_v10  ;;  %v1310_v12 = vpop.f32.mrb[1].mxu0 }
 0x17a   : > { %v527_v13 = vpop.f32.mrb[2].mxu0 }
 0x17b   : > { %v530_v14 = vpack.c.bf16 %v525_v11, %v525_v11  ;;  %v1311_v15 = vpop.f32.mrb[3].mxu0 }
 0x17d   : > { %886 = vrot.lane.b32.xlu1 %v530_v14, %s1700_s8  ;;  %650 = vrot.lane.b32.xlu0 %v530_v14, %s1701_s9  ;;  %s1086_s8 = sshll.u32 %s450_s19, 4  ;;  %s2117_s8 = int_to_ptr.vmem [resolvable:$true] %s1086_s8 }
 0x17e   : > { %1315 = vmatmul.mubr.msk.bf16.vlgmr.msra.gmra.mrb[0].mxu1 %vm534_vm3, %v530_v14  ;;  %s1600_s15 = scalar_lea.vmem %s2117_s8, 128  ;;  %p1607_p6 = scmp.lt.s32.totalorder %s2117_s8, %s1605_s21 }
 0x17f   : > { %1320 = vmatprep.mubr.msk.bf16.mxu1 %vm1699_vm0, %v1698_v0  ;;  %1319 = vmatpush3.bf16.msra.mxu1 %v604_v62  ;;  %p1601_p10 = scmp.ne.s32.totalorder %s2117_s8, %s1600_s15  ;;  %p1608_p8 = scmp.lt.s32.totalorder %s1606_s20, %s1600_s15 }
 0x180   : > { %1330 = vmatprep.subr.bf16.mxu1 %v1698_v0 }
 0x181   : > { %768 = vrot.lane.b32.xlu0 %v530_v14, %s1702_s18  ;;  %p1609_p12 = por %p1608_p8, %p1607_p6 }
 0x1ef   : > { %v651_v18 = vpop.permute.xlu0 %650  ;;  %v887_v22 = vpop.permute.xlu1 %886 }
 0x1f0   : > { %1327 = vmatmul.mubr.msk.bf16.vlgmr.msra.gmra.mrb[4].mxu0 %vm534_vm3, %v651_v18 }
 0x1f1   : > { %1337 = vmatpush3.bf16.msra.mxu0 %v774_v17  ;;  %1338 = vmatprep.mubr.msk.bf16.mxu0 %vm1699_vm0, %v1698_v0  ;;  %v1262_v17 = vld [vmem:[%s2007_s7 + $0x4] sm:$0xf] }
 0x1f2   : > { %1348 = vmatprep.subr.bf16.mxu0 %v1698_v0 }
 0x1f3   : > { %v769_v21 = vpop.permute.xlu0 %768 }
 0x1f8   : > { %1339 = vmatmul.mubr.msk.bf16.vlgmr.msra.gmra.mrb[8].mxu0 %vm534_vm3, %v769_v21 }
 0x1f9   : > { %1349 = vmatpush3.bf16.msra.mxu0 %v892_v20  ;;  %1350 = vmatprep.mubr.msk.bf16.mxu0 %vm1699_vm0, %v1698_v0  ;;  %v718_v20 = vsel %vm538_vm2, %v1262_v17, 0 }
 0x1fa   : > { %1360 = vmatprep.subr.bf16.mxu0 %v1698_v0 }
 0x200   : > { %1351 = vmatmul.mubr.msk.bf16.vlgmr.msra.gmra.mrb[12].mxu0 %vm534_vm3, %v887_v22 }
 0x201   : > { %1364 = vmatprep.mubr.msk.bf16.mxu0 %vm1699_vm0, %v1698_v0 }
 0x251   : > { %v576_v27 = vpop.f32.mrb[0].mxu1 }
 0x252   : > { %v582_v29 = vmul.f32 0.35355338, %v576_v27  ;;  %v1316_v30 = vpop.f32.mrb[1].mxu1  ;;  %v836_v27 = vsel %vm538_vm2, %v1266_v24, 0 }
 0x253   : > { %v579_v31 = vpop.f32.mrb[2].mxu1  ;;  %v1270_v30 = vld [vmem:[%s2007_s7 + $0xc] sm:$0xf]  ;;  %s2230_s7 = sld [smem:[#allocation22_spill]] }
 0x254   : > { %v1317_v32 = vpop.f32.mrb[3].mxu1  ;;  %v586_v33 = vsel %vm2056_vm5, -1e+09, %v582_v29 }
 0x255   : > { %v587_v34 = vsel %vm534_vm3, %v586_v33, -inf }
 0x256   : > { %588 = vmax.xlane.f32.xlu1 %v587_v34 }
 0x259   : > { %p2232_p13 = scmp.ne.s32.totalorder %s2230_s7, 0 }
 0x25b   : > { %p1602_p7 = pnand %p1601_p10, %p2232_p13 }
 0x25d   : > { %p1603_p4 = pneg %p1602_p7 }
 0x25f   : > { %p1610_p0 = pnand %p1609_p12, %p1603_p4 }
 0x2c3   : > { %v692_v35 = vpop.f32.mrb[4].mxu0 }
 0x2c4   : > { %v698_v36 = vmul.f32 0.35355338, %v692_v35  ;;  %v1328_v37 = vpop.f32.mrb[5].mxu0 }
 0x2c5   : > { %v695_v38 = vpop.f32.mrb[6].mxu0 }
 0x2c6   : > { %v1329_v39 = vpop.f32.mrb[7].mxu0  ;;  %v699_v40 = vsel %vm2056_vm5, -1e+09, %v698_v36 }
 0x2c7   : > { %v700_v41 = vsel %vm534_vm3, %v699_v40, -inf }
 0x2c8   : > { %701 = vmax.xlane.f32.xlu0 %v700_v41 }
 0x2cb   : > { %v810_v42 = vpop.f32.mrb[8].mxu0 }
 0x2cc   : > { %v816_v43 = vmul.f32 0.35355338, %v810_v42  ;;  %v1340_v44 = vpop.f32.mrb[9].mxu0 }
 0x2cd   : > { %v813_v45 = vpop.f32.mrb[10].mxu0 }
 0x2ce   : > { %v1341_v46 = vpop.f32.mrb[11].mxu0  ;;  %v817_v47 = vsel %vm2056_vm5, -1e+09, %v816_v43  ;;  %v1464_v45 = vld [vmem:[%s2171_s6] sm:$0xff]  }
 0x2cf   : > { %v818_v48 = vsel %vm534_vm3, %v817_v47, -inf  ;;  %1361 = vmatpush3.bf16.msra.mxu0 %v1464_v45  ;;  %v1465_v46 = vld [vmem:[%s2171_s6 + $0x8] sm:$0xff]  }
 0x2d0   : > { %819 = vmax.xlane.f32.xlu0 %v818_v48  ;;  %1362 = vmatprep.subr.bf16.mxu0 %v1698_v0 }
 0x2d3   : > { %v928_v49 = vpop.f32.mrb[12].mxu0  ;;  %1363 = vmatpush3.bf16.msra.mxu0 %v1465_v46 }
 0x2d4   : > { %v934_v50 = vmul.f32 0.35355338, %v928_v49  ;;  %v1352_v51 = vpop.f32.mrb[13].mxu0 }
 0x2d5   : > { %v931_v52 = vpop.f32.mrb[14].mxu0 }
 0x2d6   : > { %v1353_v53 = vpop.f32.mrb[15].mxu0  ;;  %v935_v54 = vsel %vm2056_vm5, -1e+09, %v934_v50 }
 0x2d7   : > { %v936_v55 = vsel %vm534_vm3, %v935_v54, -inf }
 0x2d8   : > { %937 = vmax.xlane.f32.xlu1 %v936_v55 }
 0x2e3   : > { %v589_v56 = vpop.xlane.xlu1 %588 }
 0x2e4   : > { %v590_v57 = vsub.f32 %v586_v33, %v589_v56  ;;  %v954_v33 = vsel %vm538_vm2, %v1270_v30, 0 }
 0x2e6   : > { %v591_v58 = vmul.f32 1.442695, %v590_v57 }
 0x2e8   : > { %1466 = vpow2.f32 %v591_v58 }
 0x2f2   : > { %v1467_v59 = vpop.eup %1466 }
 0x2f3   : > { %v593_v60 = vsel %vm534_vm3, %v1467_v59, 0.0 }
 0x2f4   : > { %594 = vadd.xlane.f32.xlu0 %v593_v60 }
 0x355   : > { %v702_v63 = vpop.xlane.xlu0 %701 }
 0x356   : > { %v703_v1 = vsub.f32 %v699_v40, %v702_v63 }
 0x358   : > { %v704_v2 = vmul.f32 1.442695, %v703_v1 }
 0x35a   : > { %1468 = vpow2.f32 %v704_v2 }
 0x35d   : > { %v820_v3 = vpop.xlane.xlu0 %819 }
 0x35e   : > { %v821_v4 = vsub.f32 %v817_v47, %v820_v3 }
 0x360   : > { %v822_v5 = vmul.f32 1.442695, %v821_v4 }
 0x362   : > { %1470 = vpow2.f32 %v822_v5 }
 0x364   : > { %v1469_v6 = vpop.eup %1468 }
 0x365   : > { %v938_v7 = vpop.xlane.xlu1 %937  ;;  %v706_v8 = vsel %vm534_vm3, %v1469_v6, 0.0 }
 0x366   : > { %v939_v9 = vsub.f32 %v935_v54, %v938_v7  ;;  %707 = vadd.xlane.f32.xlu1 %v706_v8 }
 0x368   : > { %v940_v10 = vmul.f32 1.442695, %v939_v9 }
 0x36a   : > { %1472 = vpow2.f32 %v940_v10 }
 0x36c   : > { %v1471_v11 = vpop.eup %1470 }
 0x36d   : > { %v824_v12 = vsel %vm534_vm3, %v1471_v11, 0.0 }
 0x36e   : > { %825 = vadd.xlane.f32.xlu0 %v824_v12 }
 0x374   : > { %v1473_v13 = vpop.eup %1472 }
 0x375   : > { %v942_v14 = vsel %vm534_vm3, %v1473_v13, 0.0 }
 0x376   : > { %943 = vadd.xlane.f32.xlu1 %v942_v14 }
 0x381   : > { %v595_v15 = vpop.xlane.xlu0 %594 }
 0x382   : > { %1474 = vrcp.f32 %v595_v15 }
 0x38c   : > { %v1475_v16 = vpop.eup %1474 }
 0x38d   : > { %v597_v18 = vmul.f32 %v1475_v16, %v1467_v59  ;;  %v1272_v59 = vld [vmem:[%s2229_s23] ss:$0 sm:$0xff] }
 0x38f   : > { %v598_v19 = vpack.c.bf16 %v597_v18, %v597_v18 }
 0x391   : > { %1321 = vmatmul.mubr.msk.bf16.vlgmr.msra.gmra.mrb[4].mxu1 %vm534_vm3, %v598_v19 }
 0x392   : > { %1331 = vmatpush3.bf16.msra.mxu1 %v718_v20  ;;  %1332 = vmatprep.mubr.msk.bf16.mxu1 %vm1699_vm0, %v1698_v0 }
 0x393   : > { %1342 = vmatprep.subr.bf16.mxu1 %v1698_v0 }
 0x3f3   : > { %v708_v21 = vpop.xlane.xlu1 %707 }
 0x3f4   : > { %1476 = vrcp.f32 %v708_v21 }
 0x3fb   : > { %v826_v22 = vpop.xlane.xlu0 %825 }
 0x3fc   : > { %1478 = vrcp.f32 %v826_v22 }
 0x3fe   : > { %v1477_v23 = vpop.eup %1476 }
 0x3ff   : > { %v710_v25 = vmul.f32 %v1477_v23, %v1469_v6 }
 0x401   : > { %v711_v26 = vpack.c.bf16 %v710_v25, %v710_v25 }
 0x403   : > { %1333 = vmatmul.mubr.msk.bf16.vlgmr.msra.gmra.mrb[8].mxu1 %vm534_vm3, %v711_v26  ;;  %v944_v28 = vpop.xlane.xlu1 %943 }
 0x404   : > { %1343 = vmatpush3.bf16.msra.mxu1 %v836_v27  ;;  %1480 = vrcp.f32 %v944_v28  ;;  %1344 = vmatprep.mubr.msk.bf16.mxu1 %vm1699_vm0, %v1698_v0 }
 0x405   : > { %1354 = vmatprep.subr.bf16.mxu1 %v1698_v0 }
 0x406   : > { %v1479_v29 = vpop.eup %1478 }
 0x407   : > { %v828_v31 = vmul.f32 %v1479_v29, %v1471_v11 }
 0x409   : > { %v829_v32 = vpack.c.bf16 %v828_v31, %v828_v31 }
 0x40b   : > { %1345 = vmatmul.mubr.msk.bf16.vlgmr.msra.gmra.mrb[12].mxu1 %vm534_vm3, %v829_v32 }
 0x40c   : > { %1355 = vmatpush3.bf16.msra.mxu1 %v954_v33  ;;  %1356 = vmatprep.mubr.msk.bf16.mxu1 %vm1699_vm0, %v1698_v0 }
 0x40e   : > { %v1481_v34 = vpop.eup %1480 }
 0x40f   : > { %v946_v35 = vmul.f32 %v1481_v34, %v1473_v13 }
 0x411   : > { %v947_v36 = vpack.c.bf16 %v946_v35, %v946_v35 }
 0x413   : > { %1357 = vmatmul.mubr.msk.bf16.vlgmr.msra.gmra.mrb[16].mxu1 %vm534_vm3, %v947_v36 }
 0x464   : > { %v640_v37 = vpop.f32.mrb[4].mxu1 }
 0x465   : > { %646 = vst.msk [vmem:[#allocation2] sm:$0xff] %vm534_vm3, %v640_v37  ;;  %v1322_v38 = vpop.f32.mrb[5].mxu1 }
 0x466   : > { %v643_v39 = vpop.f32.mrb[6].mxu1 }
 0x467   : > { %v1323_v40 = vpop.f32.mrb[7].mxu1 }
 0x4d6   : > { %v754_v41 = vpop.f32.mrb[8].mxu1 }
 0x4d7   : > { %761 = vrot.lane.b32.xlu0 %v754_v41, %s1704_s10  ;;  %v1334_v42 = vpop.f32.mrb[9].mxu1 }
 0x4d8   : > { %v757_v43 = vpop.f32.mrb[10].mxu1 }
 0x4d9   : > { %v1335_v44 = vpop.f32.mrb[11].mxu1 }
 0x4de   : > { %v872_v47 = vpop.f32.mrb[12].mxu1 }
 0x4df   : > { %879 = vrot.lane.b32.xlu1 %v872_v47, %s1705_s17  ;;  %v1346_v48 = vpop.f32.mrb[13].mxu1 }
 0x4e0   : > { %v875_v49 = vpop.f32.mrb[14].mxu1 }
 0x4e1   : > { %v1347_v50 = vpop.f32.mrb[15].mxu1 }
 0x4e6   : > { %v990_v51 = vpop.f32.mrb[16].mxu1 }
 0x4e7   : > { %997 = vrot.lane.b32.xlu1 %v990_v51, %s1706_s1  ;;  %v1358_v52 = vpop.f32.mrb[17].mxu1 }
 0x4e8   : > { %v993_v53 = vpop.f32.mrb[18].mxu1 }
 0x4e9   : > { %v1359_v54 = vpop.f32.mrb[19].mxu1 }
 0x549   : > { %v762_v55 = vpop.permute.xlu0 %761 }
 0x54a   : > { %765 = vst.msk [vmem:[#allocation2] sm:$0xff] %vm764_vm6, %v762_v55 }
 0x551   : > { %v880_v0 = vpop.permute.xlu1 %879 }
 0x552   : > { %883 = vst.msk [vmem:[#allocation2] sm:$0xff] %vm882_vm7, %v880_v0 }
 0x559   : > { %v998_v56 = vpop.permute.xlu1 %997 }
 0x55a   : > { %1001 = vst.msk [vmem:[#allocation2] sm:$0xff] %vm1000_vm8, %v998_v56 }
 0x561   : > { %v1002_v57 = vld [vmem:[#allocation2] sm:$0xff] }
 0x562   : > { %v1003_v58 = vpack.c.bf16 %v1002_v57, %v1002_v57 }
 0x564   : > { %1365 = vmatmul.mubr.msk.bf16.vlgmr.msra.gmra.mrb[16].mxu0 %vm486_vm1, %v1003_v58 }
 0x637   : > { %v1064_v60 = vpop.f32.mrb[16].mxu0 }
 0x638   : > { %v1065_v61 = vadd.f32 %v1272_v59, %v1064_v60  ;;  %v1366_v62 = vpop.f32.mrb[17].mxu0 }
 0x639   : > { %v1067_v63 = vpop.f32.mrb[18].mxu0 }
 0x63a   : > { %v1367_v1 = vpop.f32.mrb[19].mxu0  ;;  %1070 = vst.msk [vmem:[%s450_s19] sm:$0xff] %vm486_vm1, %v1065_v61 }
 0x63b   : > { %1613 = shalt.err (!%p1610_p0)
}
 0x63c   : > { %s1614_s12 = scalar_lea.hbm %s2115_s16, 128  ;;  %s1618_s22 = scalar_lea.hbm %s2231_s26, 256 }
 0x63d   : > { %p1615_p2 = scmp.ne.s32.totalorder %s2115_s16, %s1614_s12  ;;  %p1619_p3 = scmp.lt.u32.totalorder %s2115_s16, %s2231_s26 }
 0x63e   : > { %p1620_p1 = scmp.lt.u32.totalorder %s1618_s22, %s1614_s12  ;;  %p1622_p10 = scmp.lt.u32.totalorder %s1614_s12, %s2115_s16 }
 0x63f   : > { %p1616_p9 = pnand %p1615_p2, %p2232_p13 }
 0x640   : > { %p1621_p5 = por %p1620_p1, %p1619_p3 }
 0x641   : > { %p1617_p11 = pneg %p1616_p9 }
 0x642   : > { %p1623_p7 = por %p1622_p10, %p1621_p5 }
 0x644   : > { %p1624_p4 = pnand %p1623_p7, %p1617_p11 }
 0x646   : > { %1627 = shalt.err (!%p1624_p4)
}
 0x647   : > { %1378 = dma.vmem_to_hbm [thread:$0]  (%p2232_p13), %s2117_s8, 128, %s2115_s16, %s1072_s30  }
 0x648 PF: > { %s2233_s17 = sld [smem:[#allocation16_spill]]  ;;  %s2234_s1 = sld [smem:[#allocation23_spill]] }
 0x649   : > { %s2235_s25 = sld [smem:[#allocation19_spill]] }
 0x64e   : > { %s1098_s13 = sand.u32 1, %s2233_s17   ;;  %p2236_p6 = scmp.ne.s32.totalorder %s2234_s1, 0 }
 0x64f   : > { %p2237_p8 = scmp.ge.s32.totalorder %s2235_s25, 2  ;;  %s1099_s23 = scalar_lea.sflag [#allocation5], %s1098_s13 }
 0x651   : > { %p1395_p12 = pnand %p2237_p8, %p2236_p6 }
 0x653   : > { %1665 = dma.done.wait (!%p1395_p12), %s1099_s23, 128  }
 0x654   : > { %1667 = vsyncadd (!%p1395_p12), %s1099_s23, 4294967168  ;;  %s28_s10 = sadd.s32 1, %s2235_s25   ;;  %s2238_s11 = sld [smem:[#allocation17_spill]] }
 0x655   : > { %p25_p0 = scmp.ge.s32.totalorder %s28_s10, 4   ;;  %s2239_s29 = sld [smem:[#allocation21_spill]] }
 0x656   : > { %s2240_s30 = sld [smem:[#allocation18_spill]]  ;;  %s2241_s9 = sld [smem:[#allocation20_spill]] }
 0x657   : > { %s2242_s27 = smov %s1674_s28  ;;  %27 = sbr.rel (!%p25_p0) target bundleno = 13 (0xd), region = 134 }
 0x65a   : > { %s2243_s28 = smov %s2238_s11 }
 0x65e   :  { %1104 = vsyncpa [#allocation4], 1 }
 0x65f   :  { %1106 = vsyncpa [#allocation4 + $0x1], 1 }
 0x660   :  { %1107 = vsyncpa [#allocation7], 1 }
 0x661   :  { %1109 = vsyncpa [#allocation7 + $0x1], 1 }
 0x662   :  { %1110 = vsyncpa [#allocation10], 1 }
 0x663   :  { %1111 = vsyncpa [#allocation5], 1 }
 0x664   :  { %1113 = vsyncpa [#allocation5 + $0x1], 1 }

</bundles_post_ra>
